<compile_context>
chip_gen: v7x
topology: tpu7x:2x2x1
jax: 0.10.0
libtpu: 0.0.40
codegen_flags: <defaults>
</compile_context>

<pallas_src>
import jax
import jax.numpy as jnp
from jax.experimental import pallas as pl
from jax.experimental.pallas import tpu as pltpu

LANES = 128                        # lane-dense last dim (unmasked full-lane vst)
MIN_GRID_STEPS = 4                 # keep the grid >= 2 (ideally 4) steps
VMEM_LIMIT_BYTES = 32 * 1024 * 1024


def _sublane_multiple(dtype) -> int:
    """Sublane packing granularity for the dtype (8 f32 / 16 bf16 / 32 int8)."""
    return {4: 8, 2: 16, 1: 32}.get(jnp.dtype(dtype).itemsize, 8)


def _target_block_bytes() -> int:
    """Per-buffer block size; larger on v7x-class chips (~3.2 TB/s HBM)."""
    base = 4 * 1024 * 1024          # v5e/v6e: 4 MiB amortizes ~0.35us/step overhead
    try:
        info = pltpu.get_tpu_info()
        vmem = getattr(info, "vmem_capacity_bytes", None)
        if vmem is not None and vmem <= 64 * 1024 * 1024:
            # 64 MiB VMEM => v7x-class: bigger blocks hide the per-step
            # overhead against the much faster HBM.  6 MiB * 4 buffers = 24 MiB
            # stays under the 32 MiB scoped limit we set below.
            return 6 * 1024 * 1024
    except Exception:
        pass
    return base


def _sigmoid_kernel(x_ref, o_ref):
    # Compute in f32; exp goes to the EUP, reciprocal is exact (non-approx)
    # so the 1e-6 tolerance holds.
    x = x_ref[...].astype(jnp.float32)
    e = jnp.exp(-x)
    o_ref[...] = pl.reciprocal(1.0 + e, approx=False).astype(o_ref.dtype)


def _sigmoid_2d(x2d: jax.Array) -> jax.Array:
    """Run the Pallas kernel on a 2D view (rows, cols) of the input."""
    rows, cols = x2d.shape
    dtype = x2d.dtype
    itemsize = jnp.dtype(dtype).itemsize
    sub = _sublane_multiple(dtype)
    target = _target_block_bytes()

    # ---- column (lane) tiling -------------------------------------------
    # Keep the full extent when a `sub`-row-tall full-width block fits in the
    # target; otherwise tile columns in multiples of 128 lanes (the partial
    # last column block, if any, is masked by Pallas — no padded copy).
    if cols <= LANES or cols * itemsize * sub <= target:
        col_tile = cols
    else:
        col_tile = max(LANES, (target // (sub * itemsize)) // LANES * LANES)
    col_grid = pl.cdiv(cols, col_tile)

    # ---- row (sublane) tiling ---------------------------------------------
    # Biggest tile that keeps a block within `target` bytes, rounded to the
    # sublane packing, but capped so the grid has >= MIN_GRID_STEPS steps when
    # there is enough work (megacore sharding + in/out DMA overlap).
    bytes_per_row = max(1, col_tile * itemsize)
    max_tile = max(sub, (target // bytes_per_row) // sub * sub)
    rows_rounded = max(sub, -(-rows // sub) * sub)
    min_steps_rows = -(-rows // MIN_GRID_STEPS)                 # ceil(rows / 4)
    cap = max(sub, -(-min_steps_rows // sub) * sub)             # round up to sublane pack
    row_tile = min(max_tile, cap, rows_rounded)
    if rows <= sub:
        row_tile = rows                                          # tiny: one full-extent block
    row_grid = pl.cdiv(rows, row_tile)

    n_elems = rows * cols
    return pl.pallas_call(
        _sigmoid_kernel,
        out_shape=jax.ShapeDtypeStruct((rows, cols), dtype),
        grid_spec=pltpu.PrefetchScalarGridSpec(
            num_scalar_prefetch=0,
            grid=(row_grid, col_grid),
            in_specs=[pl.BlockSpec((row_tile, col_tile), lambda i, j: (i, j))],
            out_specs=pl.BlockSpec((row_tile, col_tile), lambda i, j: (i, j)),
        ),
        compiler_params=pltpu.CompilerParams(
            dimension_semantics=("parallel", "parallel"),
            vmem_limit_bytes=VMEM_LIMIT_BYTES,
        ),
        cost_estimate=pl.CostEstimate(
            flops=4 * n_elems,
            transcendentals=n_elems,
            bytes_accessed=2 * n_elems * itemsize,
        ),
    )(x2d)


def sigmoid_pallas(x: jax.Array) -> jax.Array:
    """Elementwise sigmoid, semantics identical to 1 / (1 + (-x).exp())."""
    orig_shape = x.shape
    total = x.size
    if total == 0:
        return x

    if total % LANES == 0:
        # Free view of the contiguous buffer as a lane-dense slab: zero tail,
        # no copies, unmasked 128-lane stores.
        x2d = x.reshape(total // LANES, LANES)
    else:
        # Masked fallback: collapse leading dims; the (possibly non-128)
        # last dim is handled by masked boundary blocks inside the kernel.
        last = orig_shape[-1] if (x.ndim >= 1 and orig_shape[-1] > 0) else total
        x2d = x.reshape(total // last, last)

    return _sigmoid_2d(x2d).reshape(orig_shape)


if __name__ == "__main__":
    key = jax.random.PRNGKey(0)
    # NCHW input consistent with the conv-net context of the module.
    x = jax.random.normal(key, (2, 4, 16, 16), dtype=jnp.float32)

    y = sigmoid_pallas(x)
    jax.block_until_ready(y)

    # Correctness check against the reference forward: 1 / (1 + exp(-x)).
    ref = 1.0 / (1.0 + jnp.exp(-x))
    assert y.shape == x.shape and y.dtype == x.dtype
    assert jnp.allclose(y, ref, atol=1e-6, rtol=1e-6)

    print("KERNEL_OK")
</pallas_src>

<mosaic_0001>
module attributes {stable_mosaic.version = 11 : i64} {
  func.func @_sigmoid_kernel(%arg0: i32, %arg1: i32, %arg2: memref<8x128xf32, #tpu.memory_space<vmem>>, %arg3: memref<8x128xf32, #tpu.memory_space<vmem>>) attributes {dimension_semantics = [#tpu.dimension_semantics<parallel>, #tpu.dimension_semantics<parallel>], iteration_bounds = array<i64: 2, 1>, scalar_prefetch = 0 : i64, scratch_operands = 0 : i64, tpu.core_type = #tpu.core_type<tc>, window_params = [{transform_indices = @transform_0, window_bounds = array<i64: 8, 128>}, {transform_indices = @transform_1, window_bounds = array<i64: 8, 128>}]} {
    %c0 = arith.constant 0 : index
    %c0_0 = arith.constant 0 : index
    %0 = vector.load %arg2[%c0, %c0_0] : memref<8x128xf32, #tpu.memory_space<vmem>>, vector<8x128xf32>
    %cst = arith.constant 0.000000e+00 : f32
    %1 = vector.broadcast %cst : f32 to vector<8x128xf32>
    %2 = arith.subf %1, %0 : vector<8x128xf32>
    %3 = math.exp %2 : vector<8x128xf32>
    %cst_1 = arith.constant 1.000000e+00 : f32
    %4 = vector.broadcast %cst_1 : f32 to vector<8x128xf32>
    %5 = arith.addf %4, %3 : vector<8x128xf32>
    %6 = tpu.reciprocal %5 : vector<8x128xf32> -> vector<8x128xf32>
    %c0_2 = arith.constant 0 : index
    %c0_3 = arith.constant 0 : index
    %7 = vector.load %arg3[%c0_2, %c0_3] : memref<8x128xf32, #tpu.memory_space<vmem>>, vector<8x128xf32>
    tpu.vector_store %arg3[%c0_2, %c0_3], %6 {strides = array<i32>} : memref<8x128xf32, #tpu.memory_space<vmem>>, vector<8x128xf32>,
    return
  }
  func.func @transform_0(%arg0: i32, %arg1: i32) -> (i32, i32) {
    %c0_i32 = arith.constant 0 : i32
    return %arg0, %arg1 : i32, i32
  }
  func.func @transform_1(%arg0: i32, %arg1: i32) -> (i32, i32) {
    %c0_i32 = arith.constant 0 : i32
    return %arg0, %arg1 : i32, i32
  }
}

</mosaic_0001>

<bundles_post_ra>
// kernel: tpu_custom_call.1
= control target key start
LH: loop header
LB: loop body
LE: loop exit
PB: predicated region body
PF: predicated region fallthrough
CT: control target
= control target key end

     0   :  { %6 = vsyncpa [#allocation3], 0  ;;  %s628_s0 = inlined_call_operand.hbm [shape: f32[16,128], index: 0, kind: input, shape index: {}]   ;;  %s629_s1 = inlined_call_operand.hbm [shape: f32[16,128], index: 1, kind: output, shape index: {}]  }
   0x1   :  { %8 = vsyncpa [#allocation3 + $0x1], 0 }
   0x2   :  { %9 = vsyncpa [#allocation4], 0 }
   0x3   :  { %11 = vsyncpa [#allocation4 + $0x1], 0  ;;  %s456_s6 = smov 0   ;;  %s458_s7 = smov 0  }
   0x4   :  { %s460_s8 = smov 0   ;;  %s462_s9 = smov 0  }
   0x5   :  { %s464_s10 = smov 0   ;;  %s466_s11 = smov 0  }
   0x6 LB: > { %s251_s12 = sadd.s32 4294967295, %s442_s11   ;;  %s252_s13 = sadd.s32 4294967294, %s442_s11   ;;  %s442_s11 = sphi %s466_s11, %s17_s11   ;;  %s438_s10 = sphi %s464_s10, %s645_s10   ;;  %s434_s9 = sphi %s462_s9, %s644_s9   ;;  %s430_s8 = sphi %s460_s8, %s643_s8   ;;  %s426_s7 = sphi %s458_s7, %s642_s7   ;;  %s422_s6 = sphi %s456_s6, %s641_s6  }
   0x7   : > { %s29_s14 = sadd.s32 1, %s438_s10  ;;  %s38_s15 = sadd.s32 1, %s430_s8 }
   0x8   : > { %p31_p0 = scmp.ge.s32.totalorder %s29_s14, 2  ;;  %p45_p1 = scmp.ne.s32.totalorder %s430_s8, %s426_s7 }
   0x9   : > { %p46_p2 = scmp.eq.s32.totalorder %s442_s11, 0  ;;  %p51_p3 = scmp.ne.s32.totalorder %s426_s7, %s422_s6 }
   0xa   : > { %s647_s14 = smov (%p31_p0, %s29_s14), 0  ;;  %p52_p5 = scmp.eq.s32.totalorder %s251_s12, 0 }
   0xb   : > { %p497_p4 = por %p46_p2, %p45_p1  ;;  %s33_s17 = ssub.s32 %s438_s10, %s647_s14 }
   0xc   : > { %p77_p6 = scmp.eq.s32.totalorder %s251_s12, 1  ;;  %p36_p7 = scmp.eq.s32.totalorder %s33_s17, 0 }
   0xd   : > { %p503_p8 = por %p52_p5, %p51_p3  ;;  %p83_p10 = scmp.eq.s32.totalorder %s252_s13, 1 }
   0xe   : > { %p507_p9 = por %p77_p6, %p45_p1  ;;  %p276_p13 = scmp.lt.s32.totalorder %s442_s11, 2 }
   0xf   : > { %s512_s20 = scalar_select %p36_p7, %s430_s8, %s38_s15  }
  0x10   : > { %s633_s19 = scalar_select %p507_p9, 1, 0 }
  0x11   : > { %p514_p11 = por %p83_p10, %p51_p3  ;;  %s103_s22 = sand.u32 1, %s430_s8  }
  0x12   : > { %s255_s23 = sshll.u32 %s103_s22, 3  ;;  %s256_s24 = sshll.u32 %s438_s10, 7 }
  0x13   : > { %s634_s21 = scalar_select %p514_p11, 1, 0 }
  0x14   : > { %s525_s27 = scalar_lea.hbm %s628_s0, %s256_s24  ;;  %s107_s28 = scalar_lea.vmem [#allocation2], %s255_s23 }
  0x15   : > { %s115_s29 = sshll.u32 %s107_s28, 4  ;;  %p531_p0 = pnand %p276_p13, %p497_p4  ;;  %s527_s29 = int_to_ptr.vmem [resolvable:$true] %s115_s29 }
  0x16   : > { %s104_s2 = scalar_lea.sflag [#allocation3], %s103_s22  ;;  %s330_s3 = scalar_lea.hbm %s525_s27, 128 }
  0x17   : > { %p331_p3 = scmp.ne.s32.totalorder %s525_s27, %s330_s3  ;;  %p332_p5 = pneg %p531_p0 }
  0x18   : > { %s335_s12 = scalar_lea.hbm %s628_s0, 256  ;;  %p336_p4 = scmp.lt.u32.totalorder %s525_s27, %s628_s0 }
  0x19   : > { %p333_p6 = pnand %p332_p5, %p331_p3  ;;  %p337_p10 = scmp.lt.u32.totalorder %s335_s12, %s330_s3 }
  0x1a   : > { %p339_p12 = scmp.lt.u32.totalorder %s330_s3, %s525_s27 }
  0x1b   : > { %p334_p7 = pneg %p333_p6  ;;  %p338_p13 = por %p337_p10, %p336_p4 }
  0x1d   : > { %p340_p1 = por %p339_p12, %p338_p13 }
  0x1f   : > { %p341_p2 = pnand %p340_p1, %p334_p7 }
  0x21   : > { %344 = shalt.err (!%p341_p2)
}
  0x22   : > { %s345_s16 = scalar_lea.vmem %s527_s29, 128  ;;  %s444_s17 = smov [#allocation2]  }
  0x23   : > { %p346_p3 = scmp.ne.s32.totalorder %s527_s29, %s345_s16  ;;  %s350_s22 = sshll.u32 %s444_s17, 4  ;;  %s351_s22 = int_to_ptr.vmem [resolvable:$false] %s350_s22 }
  0x24   : > { %s352_s23 = scalar_lea.vmem %s351_s22, 256  ;;  %p353_p9 = scmp.lt.s32.totalorder %s527_s29, %s351_s22 }
  0x25   : > { %p348_p6 = pnand %p346_p3, %p332_p5  ;;  %p354_p4 = scmp.lt.s32.totalorder %s352_s23, %s345_s16 }
  0x27   : > { %p349_p11 = pneg %p348_p6  ;;  %p355_p10 = por %p354_p4, %p353_p9 }
  0x29   : > { %p356_p12 = pnand %p355_p10, %p349_p11 }
  0x2b   : > { %359 = shalt.err (!%p356_p12)
}
  0x2c   : > { %271 = dma.hbm_to_vmem [thread:$0]  (!%p531_p0), %s525_s27, 128, %s527_s29, %s104_s2  }
  0x2d   : > { %p636_p1 = scmp.lt.s32.totalorder %s442_s11, 3  ;;  %p637_p2 = scmp.ge.s32.totalorder %s442_s11, 1 }
  0x2f   : > { %p121_p5 = pnand %p637_p2, %p636_p1 }
  0x30   : > { %s567_s24 = sand.u32 (!%p121_p5), 1, %s426_s7  }
  0x31   : > { %124 = sbr.rel (%p121_p5) target bundleno = 100 (0x64), region = 24  ;;  %s258_s25 = sshll.u32 (!%p121_p5), %s567_s24, 3 }
  0x32   : > { %s127_s26 = scalar_lea.sflag (!%p121_p5), [#allocation3], %s567_s24  ;;  %s130_s28 = scalar_lea.vmem (!%p121_p5), [#allocation2], %s258_s25 }
  0x38   : > { %413 = dma.done.wait (%p503_p8), %s127_s26, 128  }
  0x39   : > { %415 = vsyncadd (%p503_p8), %s127_s26, 4294967168  ;;  %v149_v0 = vld [vmem:[%s130_s28] sm:$0xff]  ;;  %s148_s27 = scalar_lea.vmem [#allocation5], %s258_s25  ;;  %s261_s30 = sshll.u32 %s434_s9, 7 }
  0x3a   : > { %v150_v1 = vsub.f32 0.0, %v149_v0  ;;  %s171_s29 = sshll.u32 %s148_s27, 4  ;;  %s581_s18 = scalar_lea.hbm %s629_s1, %s261_s30  ;;  %s576_s29 = int_to_ptr.vmem [resolvable:$true] %s171_s29 }
  0x3b   : > { %s157_s4 = scalar_lea.sflag [#allocation4], %s567_s24  ;;  %s360_s5 = scalar_lea.vmem %s576_s29, 128 }
  0x3c   : > { %v151_v2 = vmul.f32 1.442695, %v150_v1  ;;  %p361_p8 = scmp.ne.s32.totalorder %s576_s29, %s360_s5  ;;  %p638_p9 = scmp.ne.s32.totalorder %s633_s19, 0 }
  0x3d   : > { %s445_s12 = smov [#allocation5]  }
  0x3e   : > { %326 = vpow2.f32 %v151_v2  ;;  %p362_p11 = pnand %p361_p8, %p638_p9  ;;  %s364_s9 = sshll.u32 %s445_s12, 4  ;;  %s365_s9 = int_to_ptr.vmem [resolvable:$false] %s364_s9 }
  0x3f   : > { %s366_s13 = scalar_lea.vmem %s365_s9, 256  ;;  %p367_p7 = scmp.lt.s32.totalorder %s576_s29, %s365_s9 }
  0x40   : > { %p363_p0 = pneg %p362_p11  ;;  %p368_p13 = scmp.lt.s32.totalorder %s366_s13, %s360_s5 }
  0x42   : > { %p369_p3 = por %p368_p13, %p367_p7 }
  0x44   : > { %p370_p6 = pnand %p369_p3, %p363_p0 }
  0x48   : > { %v327_v3 = vpop.eup %326 }
  0x49   : > { %v153_v4 = vadd.f32 1.0, %v327_v3 }
  0x4b   : > { %328 = vrcp.f32 %v153_v4 }
  0x55   : > { %v329_v5 = vpop.eup %328 }
  0x56   : > { %155 = vst [vmem:[%s148_s27] sm:$0xff] %v329_v5 }
  0x57   : > { %373 = shalt.err (!%p370_p6)
}
  0x58   : > { %s374_s15 = scalar_lea.hbm %s581_s18, 128  ;;  %s378_s22 = scalar_lea.hbm %s629_s1, 256 }
  0x59   : > { %p375_p4 = scmp.ne.s32.totalorder %s581_s18, %s374_s15  ;;  %p379_p1 = scmp.lt.u32.totalorder %s581_s18, %s629_s1 }
  0x5a   : > { %p380_p2 = scmp.lt.u32.totalorder %s378_s22, %s374_s15  ;;  %p382_p8 = scmp.lt.u32.totalorder %s374_s15, %s581_s18 }
  0x5b   : > { %p376_p10 = pnand %p375_p4, %p638_p9 }
  0x5c   : > { %p381_p5 = por %p380_p2, %p379_p1 }
  0x5d   : > { %p377_p12 = pneg %p376_p10 }
  0x5e   : > { %p383_p11 = por %p382_p8, %p381_p5 }
  0x60   : > { %p384_p0 = pnand %p383_p11, %p377_p12 }
  0x62   : > { %387 = shalt.err (!%p384_p0)
}
  0x63   : > { %266 = dma.vmem_to_hbm [thread:$0]  (%p638_p9), %s576_s29, 128, %s581_s18, %s157_s4  }
  0x64 PF: > { %s183_s25 = sand.u32 1, %s422_s6   ;;  %p639_p7 = scmp.ne.s32.totalorder %s634_s21, 0 }
  0x65   : > { %p640_p13 = scmp.ge.s32.totalorder %s442_s11, 2  ;;  %s184_s26 = scalar_lea.sflag [#allocation4], %s183_s25 }
  0x67   : > { %p273_p3 = pnand %p640_p13, %p639_p7 }
  0x69   : > { %417 = dma.done.wait (!%p273_p3), %s184_s26, 128  }
  0x6a   : > { %419 = vsyncadd (!%p273_p3), %s184_s26, 4294967168  ;;  %s17_s11 = sadd.s32 1, %s442_s11   ;;  %s641_s6 = smov %s426_s7 }
  0x6b   : > { %p14_p6 = scmp.ge.s32.totalorder %s17_s11, 4   ;;  %s642_s7 = smov %s430_s8 }
  0x6c   : > { %s643_s8 = smov %s512_s20  ;;  %s644_s9 = smov %s438_s10 }
  0x6d   : > { %s645_s10 = smov %s647_s14  ;;  %16 = sbr.rel (!%p14_p6) target bundleno = 6 (0x6), region = 69 }
  0x74   :  { %189 = vsyncpa [#allocation3], 1 }
  0x75   :  { %191 = vsyncpa [#allocation3 + $0x1], 1 }
  0x76   :  { %192 = vsyncpa [#allocation4], 1 }
  0x77   :  { %194 = vsyncpa [#allocation4 + $0x1], 1 }

</bundles_post_ra>
